<compile_context>
chip_gen: v7x
topology: tpu7x:2x2x1
jax: 0.10.0
libtpu: 0.0.40
codegen_flags: <defaults>
</compile_context>

<pallas_src>
import functools

import jax
import jax.numpy as jnp
from jax.experimental import pallas as pl
from jax.experimental.pallas import tpu as pltpu


def _round_up(x, m):
    return ((x + m - 1) // m) * m


def _vmem_capacity_bytes():
    try:
        return int(getattr(pltpu.get_tpu_info(), "vmem_capacity_bytes"))
    except Exception:
        return 64 * 1024 * 1024  # conservative (v7x per-TensorCore)


def textcnn_kernel(emb_ref, wf_ref, bm_ref, fcw_ref, fcb_ref, out_ref, x_ref):
    TB, L, E = emb_ref.shape          # L, E already padded to multiples of 8
    KSE, KP = wf_ref.shape
    ks_max = KSE // E                 # KSE == ks_max * E exactly

    emb = emb_ref[...]                # (TB, L, E) f32

    # Build the tap-shifted (im2col) MXU operand in bf16.  Tap d of output
    # position t is emb[t + d]; a sublane roll by L - d puts it at row t.
    # Rolled-around rows (t >= L - d) only reach time positions that bm_ref
    # masks with -1e30 (see coupled invariant in the header).  Every column of
    # x_ref is rewritten each step, so no cross-step init is required.
    x_ref[:, :, 0:E] = emb.astype(jnp.bfloat16)
    for d in range(1, ks_max):
        shifted = pltpu.roll(emb, shift=L - d, axis=1)
        x_ref[:, :, d * E:(d + 1) * E] = shifted.astype(jnp.bfloat16)

    # Single fused MXU matmul for all three conv branches
    # (contraction = ks_max * E).
    x = x_ref[...].reshape(TB * L, KSE)
    acc = jnp.dot(x, wf_ref[...], preferred_element_type=jnp.float32)

    # Fused bias + validity mask, time max-pool, then ReLU (commutes with max).
    acc = acc.reshape(TB, L, KP) + bm_ref[...]
    pooled = jnp.maximum(jnp.max(acc, axis=1), 0.0)       # (TB, KP)

    # Tiny FC kept in f32 for accuracy.
    out_ref[...] = (jnp.dot(pooled, fcw_ref[...],
                            preferred_element_type=jnp.float32)
                    + fcb_ref[...])


@functools.partial(jax.jit, static_argnames=("stride", "tb_max"))
def textcnn_forward(emb, conv_ws, conv_bs, fcw, fcb, *, stride=1, tb_max=512):
    """emb: (B, L, E) f32; conv_ws[i]: (ks_i, E, K); conv_bs[i]: (1, K);
    fcw: (n_br*K, C); fcb: (1, C).  Returns (B, C) f32 logits."""
    B, L, E = emb.shape
    K = conv_ws[0].shape[-1]
    kernel_sizes = tuple(int(w.shape[0]) for w in conv_ws)
    ks_max = max(kernel_sizes)
    n_br = len(conv_ws)
    C = fcw.shape[1]

    # PyTorch would raise for an empty conv output; here an all-masked branch
    # would silently pool to relu(-1e30) = 0, so forbid it up front.
    assert L >= ks_max, "sequence length must be >= max kernel size"
    assert stride >= 1

    E_pad = _round_up(E, 8)           # lane dim of emb, tile-aligned
    L_pad = _round_up(L, 8)           # sublane dim, tile-aligned
    KSE = ks_max * E_pad              # fused contraction dim
    KP = _round_up(n_br * K, 128)     # lane-dense channel dim
    CP = _round_up(C, 128)            # lane-dense class dim

    # ---- generation-aware batch tiling -------------------------------------
    vmem_cap = _vmem_capacity_bytes()                 # 128 MiB v5e/v6e, 64 MiB v7x
    vmem_limit = min(vmem_cap * 3 // 4, 112 * 1024 * 1024)
    tile_budget = vmem_limit // 2                     # headroom for weights etc.
    # Live bytes per batch row: bf16 im2col scratch + f32 matmul/bias tensors
    # (x2 safety) + double-buffered f32 emb tile.
    row_bytes = L_pad * (2 * KSE + 8 * KP + 8 * E_pad)
    tb_cap = max(8, min(tb_max, (tile_budget // row_bytes) // 8 * 8))
    n_tiles = -(-B // tb_cap)
    if n_tiles == 1 and B >= 16:
        n_tiles = 2                                   # feed both v7x TensorCores
    TB = _round_up(-(-B // n_tiles), 8)               # minimal batch padding
    B_pad = n_tiles * TB

    # ---- fused conv weight and fused bias+validity mask --------------------
    wf = jnp.zeros((KSE, KP), jnp.float32)
    bias_mask = jnp.zeros((L_pad, KP), jnp.float32)   # padded channels stay 0
    t_idx = jnp.arange(L_pad)[:, None]
    for i, (w, b) in enumerate(zip(conv_ws, conv_bs)):
        ks = kernel_sizes[i]
        for d in range(ks):           # taps d >= ks stay zero (invariant)
            wf = wf.at[d * E_pad:d * E_pad + E, i * K:(i + 1) * K].set(w[d])
        # Valid conv-output positions for branch i: t <= L-ks and t % stride == 0
        # (and inside the un-padded length).  Elsewhere: -1e30 (invariant).
        valid = (t_idx <= (L - ks)) & ((t_idx % stride) == 0) & (t_idx < L)
        col = jnp.where(valid, b.reshape(1, K), -1e30).astype(jnp.float32)
        bias_mask = bias_mask.at[:, i * K:(i + 1) * K].set(col)

    # Padded FC weight / bias (kept f32).
    fcw_p = jnp.zeros((KP, CP), jnp.float32).at[:n_br * K, :C].set(fcw)
    fcb_p = jnp.zeros((1, CP), jnp.float32).at[:, :C].set(fcb.reshape(1, C))

    # Conv matmul operands: emb stays f32 (exact rolls in-kernel, cast to bf16
    # when building the im2col), fused conv weight is bf16.
    emb_p = jnp.zeros((B_pad, L_pad, E_pad), jnp.float32)
    emb_p = emb_p.at[:B, :L, :E].set(emb.astype(jnp.float32))
    wf = wf.astype(jnp.bfloat16)

    flops = 2 * B_pad * L_pad * KSE * KP + 2 * B_pad * KP * CP
    bytes_accessed = (emb_p.size * 4 + wf.size * 2 + bias_mask.size * 4
                      + fcw_p.size * 4 + fcb_p.size * 4 + B_pad * CP * 4)

    out = pl.pallas_call(
        textcnn_kernel,
        out_shape=jax.ShapeDtypeStruct((B_pad, CP), jnp.float32),
        grid_spec=pltpu.PrefetchScalarGridSpec(
            num_scalar_prefetch=0,
            grid=(B_pad // TB,),
            in_specs=[
                pl.BlockSpec((TB, L_pad, E_pad), lambda b: (b, 0, 0)),  # emb tile
                pl.BlockSpec((KSE, KP), lambda b: (0, 0)),              # fused conv W
                pl.BlockSpec((L_pad, KP), lambda b: (0, 0)),            # bias+mask
                pl.BlockSpec((KP, CP), lambda b: (0, 0)),               # fc W
                pl.BlockSpec((1, CP), lambda b: (0, 0)),                # fc b
            ],
            out_specs=pl.BlockSpec((TB, CP), lambda b: (b, 0)),
            scratch_shapes=[pltpu.VMEM((TB, L_pad, KSE), jnp.bfloat16)],
        ),
        compiler_params=pltpu.CompilerParams(
            dimension_semantics=("parallel",),        # megacore on v7x
            vmem_limit_bytes=vmem_limit,
        ),
        cost_estimate=pl.CostEstimate(flops=flops, transcendentals=0,
                                      bytes_accessed=bytes_accessed),
    )(emb_p, wf, bias_mask, fcw_p, fcb_p)

    return out[:B, :C]


def ref_forward(emb, conv_ws, conv_bs, fcw, fcb, stride=1):
    """Pure-JAX reference mirroring the PyTorch forward."""
    pools = []
    for w, b in zip(conv_ws, conv_bs):
        ks = w.shape[0]
        T = emb.shape[1] - ks + 1
        conv = sum(jnp.einsum('bte,ek->btk', emb[:, d:d + T, :], w[d])
                   for d in range(ks)) + b.reshape(1, 1, -1)
        conv = conv[:, ::stride, :]            # conv stride (height dim)
        conv = jnp.maximum(conv, 0.0)          # ReLU
        pools.append(jnp.max(conv, axis=1))    # max-pool over full length
    cat = jnp.concatenate(pools, axis=1)
    return cat @ fcw + fcb.reshape(1, -1)


if __name__ == "__main__":
    # Small synthetic config consistent with the module's __init__.
    B, L = 2, 16                # batch, sequence length
    V, E = 50, 32               # vocab_size, embedding_dim
    K = 8                       # num_kernels
    KS = (3, 4, 5)              # kernel_size
    C = 4                       # num_class
    PAD = 0                     # padding_index
    STRIDE = 1                  # stride

    key = jax.random.PRNGKey(0)
    ks_ = jax.random.split(key, 10)

    emb_table = 0.1 * jax.random.normal(ks_[0], (V, E), jnp.float32)
    emb_table = emb_table.at[PAD].set(0.0)            # padding_idx row is zero
    text = jax.random.randint(ks_[1], (B, L), 0, V)   # token ids

    conv_ws = [0.1 * jax.random.normal(ks_[2 + i], (KS[i], E, K), jnp.float32)
               for i in range(3)]
    conv_bs = [0.1 * jax.random.normal(ks_[5 + i], (1, K), jnp.float32)
               for i in range(3)]
    fcw = 0.1 * jax.random.normal(ks_[8], (3 * K, C), jnp.float32)
    fcb = 0.1 * jax.random.normal(ks_[9], (1, C), jnp.float32)

    # Embedding lookup (data-dependent gather: glue, outside the kernel).
    emb = emb_table[text]                              # (B, L, E)

    out = textcnn_forward(emb, conv_ws, conv_bs, fcw, fcb, stride=STRIDE)
    jax.block_until_ready(out)

    ref = ref_forward(emb, conv_ws, conv_bs, fcw, fcb, stride=STRIDE)
    assert out.shape == (B, C)
    # bf16 conv-matmul operands with f32 accumulation -> relaxed tolerance.
    assert jnp.allclose(out, ref, atol=1e-2, rtol=1e-2), (out, ref)

    print("KERNEL_OK")
</pallas_src>

<mosaic_0001>
module attributes {stable_mosaic.version = 11 : i64} {
  func.func @textcnn_kernel(%arg0: i32, %arg1: memref<8x16x32xf32, #tpu.memory_space<vmem>>, %arg2: memref<160x128xbf16, #tpu.memory_space<vmem>>, %arg3: memref<16x128xf32, #tpu.memory_space<vmem>>, %arg4: memref<128x128xf32, #tpu.memory_space<vmem>>, %arg5: memref<1x128xf32, #tpu.memory_space<vmem>>, %arg6: memref<8x128xf32, #tpu.memory_space<vmem>>, %arg7: memref<8x16x160xbf16, #tpu.memory_space<vmem>>) attributes {dimension_semantics = [#tpu.dimension_semantics<parallel>], iteration_bounds = array<i64: 1>, scalar_prefetch = 0 : i64, scratch_operands = 1 : i64, tpu.core_type = #tpu.core_type<tc>, window_params = [{transform_indices = @transform_0, window_bounds = array<i64: 8, 16, 32>}, {pipeline_mode = #tpu.pipeline_mode<synchronous>, transform_indices = @transform_1, window_bounds = array<i64: 160, 128>}, {pipeline_mode = #tpu.pipeline_mode<synchronous>, transform_indices = @transform_2, window_bounds = array<i64: 16, 128>}, {pipeline_mode = #tpu.pipeline_mode<synchronous>, transform_indices = @transform_3, window_bounds = array<i64: 128, 128>}, {pipeline_mode = #tpu.pipeline_mode<synchronous>, transform_indices = @transform_4, window_bounds = array<i64: 1, 128>}, {transform_indices = @transform_5, window_bounds = array<i64: 8, 128>}]} {
    %c0 = arith.constant 0 : index
    %c0_0 = arith.constant 0 : index
    %c0_1 = arith.constant 0 : index
    %0 = vector.load %arg1[%c0, %c0_0, %c0_1] : memref<8x16x32xf32, #tpu.memory_space<vmem>>, vector<8x16x32xf32>
    %1 = arith.truncf %0 : vector<8x16x32xf32> to vector<8x16x32xbf16>
    %c0_2 = arith.constant 0 : index
    %c0_3 = arith.constant 0 : index
    %c0_4 = arith.constant 0 : index
    %2 = vector.load %arg7[%c0_2, %c0_3, %c0_4] : memref<8x16x160xbf16, #tpu.memory_space<vmem>>, vector<8x16x32xbf16>
    tpu.vector_store %arg7[%c0_2, %c0_3, %c0_4], %1 {strides = array<i32>} : memref<8x16x160xbf16, #tpu.memory_space<vmem>>, vector<8x16x32xbf16>,
    %c15_i32 = arith.constant 15 : i32
    %3 = tpu.dynamic_rotate %0 by %c15_i32 dim 1 : vector<8x16x32xf32>, i32 -> vector<8x16x32xf32>
    %4 = arith.truncf %3 : vector<8x16x32xf32> to vector<8x16x32xbf16>
    %c0_5 = arith.constant 0 : index
    %c0_6 = arith.constant 0 : index
    %c32 = arith.constant 32 : index
    %5 = vector.load %arg7[%c0_5, %c0_6, %c32] : memref<8x16x160xbf16, #tpu.memory_space<vmem>>, vector<8x16x32xbf16>
    tpu.vector_store %arg7[%c0_5, %c0_6, %c32], %4 {strides = array<i32>} : memref<8x16x160xbf16, #tpu.memory_space<vmem>>, vector<8x16x32xbf16>,
    %c14_i32 = arith.constant 14 : i32
    %6 = tpu.dynamic_rotate %0 by %c14_i32 dim 1 : vector<8x16x32xf32>, i32 -> vector<8x16x32xf32>
    %7 = arith.truncf %6 : vector<8x16x32xf32> to vector<8x16x32xbf16>
    %c0_7 = arith.constant 0 : index
    %c0_8 = arith.constant 0 : index
    %c64 = arith.constant 64 : index
    %8 = vector.load %arg7[%c0_7, %c0_8, %c64] : memref<8x16x160xbf16, #tpu.memory_space<vmem>>, vector<8x16x32xbf16>
    tpu.vector_store %arg7[%c0_7, %c0_8, %c64], %7 {strides = array<i32>} : memref<8x16x160xbf16, #tpu.memory_space<vmem>>, vector<8x16x32xbf16>,
    %c13_i32 = arith.constant 13 : i32
    %9 = tpu.dynamic_rotate %0 by %c13_i32 dim 1 : vector<8x16x32xf32>, i32 -> vector<8x16x32xf32>
    %10 = arith.truncf %9 : vector<8x16x32xf32> to vector<8x16x32xbf16>
    %c0_9 = arith.constant 0 : index
    %c0_10 = arith.constant 0 : index
    %c96 = arith.constant 96 : index
    %11 = vector.load %arg7[%c0_9, %c0_10, %c96] : memref<8x16x160xbf16, #tpu.memory_space<vmem>>, vector<8x16x32xbf16>
    tpu.vector_store %arg7[%c0_9, %c0_10, %c96], %10 {strides = array<i32>} : memref<8x16x160xbf16, #tpu.memory_space<vmem>>, vector<8x16x32xbf16>,
    %c12_i32 = arith.constant 12 : i32
    %12 = tpu.dynamic_rotate %0 by %c12_i32 dim 1 : vector<8x16x32xf32>, i32 -> vector<8x16x32xf32>
    %13 = arith.truncf %12 : vector<8x16x32xf32> to vector<8x16x32xbf16>
    %c0_11 = arith.constant 0 : index
    %c0_12 = arith.constant 0 : index
    %c128 = arith.constant 128 : index
    %14 = vector.load %arg7[%c0_11, %c0_12, %c128] : memref<8x16x160xbf16, #tpu.memory_space<vmem>>, vector<8x16x32xbf16>
    tpu.vector_store %arg7[%c0_11, %c0_12, %c128], %13 {strides = array<i32>} : memref<8x16x160xbf16, #tpu.memory_space<vmem>>, vector<8x16x32xbf16>,
    %c0_13 = arith.constant 0 : index
    %c0_14 = arith.constant 0 : index
    %c0_15 = arith.constant 0 : index
    %15 = vector.load %arg7[%c0_13, %c0_14, %c0_15] : memref<8x16x160xbf16, #tpu.memory_space<vmem>>, vector<8x16x160xbf16>
    %16 = vector.shape_cast %15 : vector<8x16x160xbf16> to vector<128x160xbf16>
    %c0_16 = arith.constant 0 : index
    %c0_17 = arith.constant 0 : index
    %17 = vector.load %arg2[%c0_16, %c0_17] : memref<160x128xbf16, #tpu.memory_space<vmem>>, vector<160x128xbf16>
    %cst = arith.constant dense<0.000000e+00> : vector<128x128xf32>
    %18 = tpu.matmul %16, %17, %cst {dimension_numbers = #tpu.dot_dimension_numbers<[1], [0], [0], [1], [0, 0, 1, 1], [], []>} : vector<128x160xbf16>, vector<160x128xbf16>, vector<128x128xf32> -> vector<128x128xf32>
    %19 = vector.shape_cast %18 : vector<128x128xf32> to vector<8x16x128xf32>
    %c0_18 = arith.constant 0 : index
    %c0_19 = arith.constant 0 : index
    %20 = vector.load %arg3[%c0_18, %c0_19] : memref<16x128xf32, #tpu.memory_space<vmem>>, vector<16x128xf32>
    %21 = vector.shape_cast %20 : vector<16x128xf32> to vector<1x16x128xf32>
    %22 = vector.broadcast %21 : vector<1x16x128xf32> to vector<8x16x128xf32>
    %23 = arith.addf %19, %22 : vector<8x16x128xf32>
    %cst_20 = arith.constant dense<0xFF800000> : vector<8x128xf32>
    %24 = vector.multi_reduction <maximumf>, %23, %cst_20 [1] : vector<8x16x128xf32> to vector<8x128xf32>
    %cst_21 = arith.constant 0.000000e+00 : f32
    %25 = vector.broadcast %cst_21 : f32 to vector<8x128xf32>
    %26 = arith.maximumf %24, %25 : vector<8x128xf32>
    %c0_22 = arith.constant 0 : index
    %c0_23 = arith.constant 0 : index
    %27 = vector.load %arg4[%c0_22, %c0_23] : memref<128x128xf32, #tpu.memory_space<vmem>>, vector<128x128xf32>
    %cst_24 = arith.constant dense<0.000000e+00> : vector<8x128xf32>
    %28 = tpu.matmul %26, %27, %cst_24 {dimension_numbers = #tpu.dot_dimension_numbers<[1], [0], [0], [1], [0, 0, 1, 1], [], []>} : vector<8x128xf32>, vector<128x128xf32>, vector<8x128xf32> -> vector<8x128xf32>
    %c0_25 = arith.constant 0 : index
    %c0_26 = arith.constant 0 : index
    %29 = vector.load %arg5[%c0_25, %c0_26] : memref<1x128xf32, #tpu.memory_space<vmem>>, vector<1x128xf32>
    %30 = vector.broadcast %29 : vector<1x128xf32> to vector<8x128xf32>
    %31 = arith.addf %28, %30 : vector<8x128xf32>
    %c0_27 = arith.constant 0 : index
    %c0_28 = arith.constant 0 : index
    %32 = vector.load %arg6[%c0_27, %c0_28] : memref<8x128xf32, #tpu.memory_space<vmem>>, vector<8x128xf32>
    tpu.vector_store %arg6[%c0_27, %c0_28], %31 {strides = array<i32>} : memref<8x128xf32, #tpu.memory_space<vmem>>, vector<8x128xf32>,
    return
  }
  func.func @transform_0(%arg0: i32) -> (i32, i32, i32) {
    %c0_i32 = arith.constant 0 : i32
    %c0_i32_0 = arith.constant 0 : i32
    %c0_i32_1 = arith.constant 0 : i32
    return %arg0, %c0_i32, %c0_i32_0 : i32, i32, i32
  }
  func.func @transform_1(%arg0: i32) -> (i32, i32) {
    %c0_i32 = arith.constant 0 : i32
    %c0_i32_0 = arith.constant 0 : i32
    %c0_i32_1 = arith.constant 0 : i32
    return %c0_i32, %c0_i32_0 : i32, i32
  }
  func.func @transform_2(%arg0: i32) -> (i32, i32) {
    %c0_i32 = arith.constant 0 : i32
    %c0_i32_0 = arith.constant 0 : i32
    %c0_i32_1 = arith.constant 0 : i32
    return %c0_i32, %c0_i32_0 : i32, i32
  }
  func.func @transform_3(%arg0: i32) -> (i32, i32) {
    %c0_i32 = arith.constant 0 : i32
    %c0_i32_0 = arith.constant 0 : i32
    %c0_i32_1 = arith.constant 0 : i32
    return %c0_i32, %c0_i32_0 : i32, i32
  }
  func.func @transform_4(%arg0: i32) -> (i32, i32) {
    %c0_i32 = arith.constant 0 : i32
    %c0_i32_0 = arith.constant 0 : i32
    %c0_i32_1 = arith.constant 0 : i32
    return %c0_i32, %c0_i32_0 : i32, i32
  }
  func.func @transform_5(%arg0: i32) -> (i32, i32) {
    %c0_i32 = arith.constant 0 : i32
    %c0_i32_0 = arith.constant 0 : i32
    return %arg0, %c0_i32 : i32, i32
  }
}

</mosaic_0001>

<bundles_post_ra>
// kernel: textcnn_forward.1
= control target key start
LH: loop header
LB: loop body
LE: loop exit
PB: predicated region body
PF: predicated region fallthrough
CT: control target
= control target key end

     0   :  { %v70_v0 = vlaneseq  ;;  %vm45_vm0 = vcmask 261120   ;;  %v903_v3 = vmov 0   ;;  %s904_s26 = smov 32   ;;  %s905_s6 = smov 96   ;;  %vm129_vm5 = vcmask 523520   ;;  %s1436_s0 = inlined_call_operand.vmem [shape: f32[8,16,32], index: 0, kind: input, shape index: {}]   ;;  %s1437_s1 = inlined_call_operand.vmem [shape: bf16[160,128], index: 1, kind: input, shape index: {}]   ;;  %s1438_s3 = inlined_call_operand.vmem [shape: f32[128,128], index: 3, kind: input, shape index: {}]   ;;  %s1439_s2 = inlined_call_operand.vmem [shape: f32[16,128], index: 2, kind: input, shape index: {}]   ;;  %s1440_s4 = inlined_call_operand.vmem [shape: f32[1,128], index: 4, kind: input, shape index: {}]   ;;  %s1441_s5 = inlined_call_operand.vmem [shape: f32[8,128], index: 5, kind: output, shape index: {}]  }
   0x1   :  { %v943_v1 = vld [vmem:[%s1436_s0] sm:$0xff]  ;;  %v948_v2 = vld [vmem:[%s1436_s0 + $0x8] sm:$0xff]  ;;  %471 = vmatprep.subr.bf16.mxu0 %v903_v3  ;;  %866 = vmatprep.subr.bf16.mxu1 %v903_v3  ;;  %v1001_v30 = vld [vmem:[%s1436_s0 + $0x10] sm:$0xff]  ;;  %s906_s13 = smov 64   ;;  %vm211_vm6 = vcmask 785920   ;;  %vm293_vm7 = vcmask 1048320  }
   0x2   :  { %v54_v4 = vrot.slane %v943_v1, 1  ;;  %v62_v5 = vrot.slane %v948_v2, 1  ;;  %v954_v6 = vshrl.u32 %v70_v0, 7  ;;  %v302_v7 = vrot.slane %v943_v1, 4  ;;  %v968_v13 = vld [vmem:[%s1436_s0 + $0x40] sm:$0xff]  ;;  %v973_v14 = vld [vmem:[%s1436_s0 + $0x48] sm:$0xff] }
   0x3   :  { %v310_v8 = vrot.slane %v948_v2, 4  ;;  %v220_v9 = vrot.slane %v943_v1, 3  ;;  %v228_v10 = vrot.slane %v948_v2, 3  ;;  %v138_v11 = vrot.slane %v943_v1, 2  ;;  %v893_v31 = vld [vmem:[%s1437_s1] sm:$0xff]   ;;  %v1015_v36 = vld [vmem:[%s1436_s0 + $0x18] sm:$0xff] }
   0x4   :  { %vm72_vm1 = vcmp.lt.s32.totalorder %v954_v6, 7  ;;  %vm318_vm2 = vcmp.lt.s32.totalorder %v954_v6, 4  ;;  %vm236_vm3 = vcmp.lt.s32.totalorder %v954_v6, 5  ;;  %v146_v12 = vrot.slane %v948_v2, 2  ;;  %472 = vmatpush1.bf16.msra.mxu0 %v893_v31  ;;  %876 = vmatpush1.bf16.msra.mxu1 %v893_v31  ;;  %v894_v41 = vld [vmem:[%s1437_s1 + $0x8] sm:$0xff]   ;;  %v1031_v46 = vld [vmem:[%s1436_s0 + $0x50] sm:$0xff] }
   0x5   :  { %v73_v15 = vsel %vm72_vm1, %v54_v4, %v62_v5  ;;  %v81_v16 = vsel %vm72_vm1, %v62_v5, %v54_v4  ;;  %v319_v17 = vsel %vm318_vm2, %v302_v7, %v310_v8  ;;  %v327_v18 = vsel %vm318_vm2, %v310_v8, %v302_v7  ;;  %473 = vmatprep.subr.bf16.mxu0 %v903_v3  ;;  %v1052_v55 = vld [vmem:[%s1436_s0 + $0x58] sm:$0xff]  ;;  %v895_v60 = vld [vmem:[%s1437_s1 + $0x10] sm:$0xff]  }
   0x6   :  { %v89_v19 = vpack.c.bf16 %v81_v16, %v73_v15  ;;  %v335_v20 = vpack.c.bf16 %v327_v18, %v319_v17  ;;  %v237_v21 = vsel %vm236_vm3, %v220_v9, %v228_v10  ;;  %v245_v22 = vsel %vm236_vm3, %v228_v10, %v220_v9  ;;  %867 = vmatprep.subr.bf16.mxu1 %v903_v3  ;;  %v1076_v9 = vld [vmem:[%s1436_s0 + $0x20] sm:$0xff] }
   0x7   :  { %v253_v23 = vpack.c.bf16 %v245_v22, %v237_v21  ;;  %vm154_vm4 = vcmp.lt.s32.totalorder %v954_v6, 6  ;;  %v58_v24 = vrot.slane %v968_v13, 1  ;;  %v66_v25 = vrot.slane %v973_v14, 1 }
   0x8   :  { %343 = vst.msk [vmem:[#allocation2 + $0x8] sm:$0xff] %vm45_vm0, %v335_v20  ;;  %105 = vrot.lane.b32.xlu0 %v89_v19, %s904_s26  ;;  %v155_v26 = vsel %vm154_vm4, %v138_v11, %v146_v12  ;;  %v163_v27 = vsel %vm154_vm4, %v146_v12, %v138_v11  ;;  %v306_v28 = vrot.slane %v968_v13, 4  ;;  %v314_v29 = vrot.slane %v973_v14, 4  ;;  %474 = vmatpush1.bf16.msra.mxu0 %v894_v41  ;;  %v896_v20 = vld [vmem:[%s1437_s1 + $0x18] sm:$0xff]  }
   0x9   :  { %269 = vrot.lane.b32.xlu1 %v253_v23, %s905_s6  ;;  %v171_v32 = vpack.c.bf16 %v163_v27, %v155_v26  ;;  %v77_v33 = vsel %vm72_vm1, %v58_v24, %v66_v25  ;;  %v85_v34 = vsel %vm72_vm1, %v66_v25, %v58_v24  ;;  %v142_v35 = vrot.slane %v968_v13, 2  ;;  %877 = vmatpush1.bf16.msra.mxu1 %v894_v41  ;;  %v1102_v25 = vld [vmem:[%s1436_s0 + $0x28] sm:$0xff] }
   0xa   :  { %v93_v37 = vpack.c.bf16 %v85_v34, %v77_v33  ;;  %v323_v38 = vsel %vm318_vm2, %v306_v28, %v314_v29  ;;  %v331_v39 = vsel %vm318_vm2, %v314_v29, %v306_v28  ;;  %v150_v40 = vrot.slane %v973_v14, 2  ;;  %475 = vmatprep.subr.bf16.mxu0 %v903_v3  ;;  %868 = vmatprep.subr.bf16.mxu1 %v903_v3 }
   0xb   :  { %v339_v42 = vpack.c.bf16 %v331_v39, %v323_v38  ;;  %v224_v43 = vrot.slane %v968_v13, 3  ;;  %v232_v44 = vrot.slane %v973_v14, 3  ;;  %v55_v45 = vrot.slane %v1001_v30, 1 }
   0xc   :  { %187 = vrot.lane.b32.xlu0 %v171_v32, %s906_s13  ;;  %v159_v47 = vsel %vm154_vm4, %v142_v35, %v150_v40  ;;  %v167_v48 = vsel %vm154_vm4, %v150_v40, %v142_v35  ;;  %v63_v49 = vrot.slane %v1015_v36, 1  ;;  %v303_v50 = vrot.slane %v1001_v30, 4  ;;  %476 = vmatpush1.bf16.msra.mxu0 %v895_v60 }
   0xd   :  { %347 = vst.msk [vmem:[#allocation2 + $0x48] sm:$0xff] %vm45_vm0, %v339_v42  ;;  %113 = vrot.lane.b32.xlu1 %v93_v37, %s904_s26  ;;  %v175_v51 = vpack.c.bf16 %v167_v48, %v159_v47  ;;  %v241_v52 = vsel %vm236_vm3, %v224_v43, %v232_v44  ;;  %v249_v53 = vsel %vm236_vm3, %v232_v44, %v224_v43  ;;  %v311_v54 = vrot.slane %v1015_v36, 4  ;;  %v897_v42 = vld [vmem:[%s1437_s1 + $0x20] sm:$0xff]  }
   0xe   :  { %v257_v56 = vpack.c.bf16 %v249_v53, %v241_v52  ;;  %v74_v57 = vsel %vm72_vm1, %v55_v45, %v63_v49  ;;  %v82_v58 = vsel %vm72_vm1, %v63_v49, %v55_v45  ;;  %v139_v59 = vrot.slane %v1001_v30, 2  ;;  %878 = vmatpush1.bf16.msra.mxu1 %v895_v60  ;;  %477 = vmatprep.subr.bf16.mxu0 %v903_v3  ;;  %v1136_v47 = vld [vmem:[%s1436_s0 + $0x60] sm:$0xff]  ;;  %v1147_v52 = vld [vmem:[%s1436_s0 + $0x68] sm:$0xff] }
   0xf   :  { %v90_v61 = vpack.c.bf16 %v82_v58, %v74_v57  ;;  %v320_v62 = vsel %vm318_vm2, %v303_v50, %v311_v54  ;;  %v328_v63 = vsel %vm318_vm2, %v311_v54, %v303_v50  ;;  %v147_v0 = vrot.slane %v1015_v36, 2  ;;  %869 = vmatprep.subr.bf16.mxu1 %v903_v3  ;;  %v352_v26 = vld [vmem:[#allocation2 + $0x8] sm:$0xff] }
  0x10   :  { %195 = vrot.lane.b32.xlu0 %v175_v51, %s906_s13  ;;  %v336_v4 = vpack.c.bf16 %v328_v63, %v320_v62  ;;  %v221_v5 = vrot.slane %v1001_v30, 3  ;;  %v229_v7 = vrot.slane %v1015_v36, 3  ;;  %v59_v8 = vrot.slane %v1031_v46, 1  ;;  %781 = vmatprep.mubr.msk.bf16.mxu0 %vm45_vm0, %v352_v26  ;;  %v898_v62 = vld [vmem:[%s1437_s1 + $0x28] sm:$0xff]  }
  0x11   :  { %277 = vrot.lane.b32.xlu1 %v257_v56, %s905_s6  ;;  %v156_v10 = vsel %vm154_vm4, %v139_v59, %v147_v0  ;;  %v164_v11 = vsel %vm154_vm4, %v147_v0, %v139_v59  ;;  %v67_v12 = vrot.slane %v1052_v55, 1  ;;  %v307_v15 = vrot.slane %v1031_v46, 4  ;;  %478 = vmatpush1.bf16.msra.mxu0 %v896_v20 }
  0x12   :  { %344 = vst.msk [vmem:[#allocation2 + $0x18] sm:$0xff] %vm45_vm0, %v336_v4  ;;  %v172_v16 = vpack.c.bf16 %v164_v11, %v156_v10  ;;  %v238_v17 = vsel %vm236_vm3, %v221_v5, %v229_v7  ;;  %v246_v18 = vsel %vm236_vm3, %v229_v7, %v221_v5  ;;  %v315_v19 = vrot.slane %v1052_v55, 4  ;;  %879 = vmatpush1.bf16.msra.mxu1 %v896_v20 }
  0x13   :  { %v254_v21 = vpack.c.bf16 %v246_v18, %v238_v17  ;;  %v78_v22 = vsel %vm72_vm1, %v59_v8, %v67_v12  ;;  %v86_v23 = vsel %vm72_vm1, %v67_v12, %v59_v8  ;;  %v143_v24 = vrot.slane %v1031_v46, 2  ;;  %479 = vmatprep.subr.bf16.mxu0 %v903_v3  ;;  %870 = vmatprep.subr.bf16.mxu1 %v903_v3  ;;  %v1181_v12 = vld [vmem:[%s1436_s0 + $0x30] sm:$0xff] }
  0x14   :  { %107 = vrot.lane.b32.xlu0 %v90_v61, %s904_s26  ;;  %v94_v27 = vpack.c.bf16 %v86_v23, %v78_v22  ;;  %v324_v28 = vsel %vm318_vm2, %v307_v15, %v315_v19  ;;  %v332_v29 = vsel %vm318_vm2, %v315_v19, %v307_v15  ;;  %v151_v31 = vrot.slane %v1052_v55, 2  ;;  %v360_v32 = vld [vmem:[#allocation2 + $0x48] sm:$0xff]  ;;  %v1190_v19 = vld [vmem:[%s1436_s0 + $0x38] sm:$0xff] }
  0x15   :  { %189 = vrot.lane.b32.xlu1 %v172_v16, %s906_s13  ;;  %v340_v33 = vpack.c.bf16 %v332_v29, %v324_v28  ;;  %v225_v34 = vrot.slane %v1031_v46, 3  ;;  %v233_v35 = vrot.slane %v1052_v55, 3  ;;  %v56_v37 = vrot.slane %v1076_v9, 1  ;;  %785 = vmatprep.mubr.msk.bf16.mxu1 %vm45_vm0, %v360_v32 }
  0x16   :  { %v160_v38 = vsel %vm154_vm4, %v143_v24, %v151_v31  ;;  %v168_v39 = vsel %vm154_vm4, %v151_v31, %v143_v24  ;;  %v64_v40 = vrot.slane %v1102_v25, 1  ;;  %v304_v41 = vrot.slane %v1076_v9, 4  ;;  %480 = vmatpush1.bf16.msra.mxu0 %v897_v42  ;;  %880 = vmatpush1.bf16.msra.mxu1 %v897_v42  ;;  %v899_v24 = vld [vmem:[%s1437_s1 + $0x30] sm:$0xff]  }
  0x17   :  { %348 = vst.msk [vmem:[#allocation2 + $0x58] sm:$0xff] %vm45_vm0, %v340_v33  ;;  %v242_v43 = vsel %vm236_vm3, %v225_v34, %v233_v35  ;;  %v250_v44 = vsel %vm236_vm3, %v233_v35, %v225_v34  ;;  %v312_v45 = vrot.slane %v1102_v25, 4  ;;  %v176_v48 = vpack.c.bf16 %v168_v39, %v160_v38  ;;  %481 = vmatprep.subr.bf16.mxu0 %v903_v3  ;;  %v1222_v39 = vld [vmem:[%s1436_s0 + $0x70] sm:$0xff] }
  0x18   :  { %271 = vrot.lane.b32.xlu0 %v254_v21, %s905_s6  ;;  %v258_v49 = vpack.c.bf16 %v250_v44, %v242_v43  ;;  %v75_v50 = vsel %vm72_vm1, %v56_v37, %v64_v40  ;;  %v140_v51 = vrot.slane %v1076_v9, 2  ;;  %v83_v53 = vsel %vm72_vm1, %v64_v40, %v56_v37  ;;  %871 = vmatprep.subr.bf16.mxu1 %v903_v3  ;;  %v1234_v44 = vld [vmem:[%s1436_s0 + $0x78] sm:$0xff] }
  0x19   :  { %115 = vrot.lane.b32.xlu1 %v94_v27, %s904_s26  ;;  %v321_v54 = vsel %vm318_vm2, %v304_v41, %v312_v45  ;;  %v329_v56 = vsel %vm318_vm2, %v312_v45, %v304_v41  ;;  %v148_v57 = vrot.slane %v1102_v25, 2  ;;  %v222_v59 = vrot.slane %v1076_v9, 3  ;;  %v900_v45 = vld [vmem:[%s1437_s1 + $0x38] sm:$0xff]  }
  0x1a   :  { %v337_v58 = vpack.c.bf16 %v329_v56, %v321_v54  ;;  %v230_v60 = vrot.slane %v1102_v25, 3  ;;  %v60_v61 = vrot.slane %v1136_v47, 1  ;;  %v68_v4 = vrot.slane %v1147_v52, 1  ;;  %482 = vmatpush1.bf16.msra.mxu0 %v898_v62  ;;  %881 = vmatpush1.bf16.msra.mxu1 %v898_v62 }
  0x1b   :  { %v157_v63 = vsel %vm154_vm4, %v140_v51, %v148_v57  ;;  %v165_v0 = vsel %vm154_vm4, %v148_v57, %v140_v51  ;;  %v308_v5 = vrot.slane %v1136_v47, 4  ;;  %v91_v7 = vpack.c.bf16 %v83_v53, %v75_v50  ;;  %483 = vmatprep.subr.bf16.mxu0 %v903_v3  ;;  %872 = vmatprep.subr.bf16.mxu1 %v903_v3 }
  0x1c   :  { %197 = vrot.lane.b32.xlu0 %v176_v48, %s906_s13  ;;  %345 = vst.msk [vmem:[#allocation2 + $0x28] sm:$0xff] %vm45_vm0, %v337_v58  ;;  %v239_v8 = vsel %vm236_vm3, %v222_v59, %v230_v60  ;;  %v247_v10 = vsel %vm236_vm3, %v230_v60, %v222_v59  ;;  %v316_v11 = vrot.slane %v1147_v52, 4  ;;  %v173_v15 = vpack.c.bf16 %v165_v0, %v157_v63 }
  0x1d   :  { %279 = vrot.lane.b32.xlu1 %v258_v49, %s905_s6  ;;  %v255_v16 = vpack.c.bf16 %v247_v10, %v239_v8  ;;  %v79_v17 = vsel %vm72_vm1, %v60_v61, %v68_v4  ;;  %v144_v18 = vrot.slane %v1136_v47, 2  ;;  %v87_v20 = vsel %vm72_vm1, %v68_v4, %v60_v61 }
  0x1e   :  { %v325_v21 = vsel %vm318_vm2, %v308_v5, %v316_v11  ;;  %v333_v22 = vsel %vm318_vm2, %v316_v11, %v308_v5  ;;  %v152_v23 = vrot.slane %v1147_v52, 2  ;;  %v226_v27 = vrot.slane %v1136_v47, 3  ;;  %484 = vmatpush1.bf16.msra.mxu0 %v899_v24  ;;  %882 = vmatpush1.bf16.msra.mxu1 %v899_v24  ;;  %v901_v5 = vld [vmem:[%s1437_s1 + $0x40] sm:$0xff]  }
  0x1f   :  { %v341_v26 = vpack.c.bf16 %v333_v22, %v325_v21  ;;  %v234_v28 = vrot.slane %v1147_v52, 3  ;;  %v57_v29 = vrot.slane %v1181_v12, 1  ;;  %v65_v33 = vrot.slane %v1190_v19, 1  ;;  %485 = vmatprep.subr.bf16.mxu0 %v903_v3  ;;  %873 = vmatprep.subr.bf16.mxu1 %v903_v3 }
  0x20   :  { %109 = vrot.lane.b32.xlu0 %v91_v7, %s904_s26  ;;  %v161_v31 = vsel %vm154_vm4, %v144_v18, %v152_v23  ;;  %v169_v32 = vsel %vm154_vm4, %v152_v23, %v144_v18  ;;  %v305_v34 = vrot.slane %v1181_v12, 4  ;;  %v95_v35 = vpack.c.bf16 %v87_v20, %v79_v17 }
  0x21   :  { %191 = vrot.lane.b32.xlu1 %v173_v15, %s906_s13  ;;  %349 = vst.msk [vmem:[#allocation2 + $0x68] sm:$0xff] %vm45_vm0, %v341_v26  ;;  %v243_v37 = vsel %vm236_vm3, %v226_v27, %v234_v28  ;;  %v313_v38 = vrot.slane %v1190_v19, 4  ;;  %v251_v40 = vsel %vm236_vm3, %v234_v28, %v226_v27  ;;  %v76_v41 = vsel %vm72_vm1, %v57_v29, %v65_v33  ;;  %v902_v26 = vld [vmem:[%s1437_s1 + $0x48] sm:$0xff]  }
  0x22   :  { %v84_v42 = vsel %vm72_vm1, %v65_v33, %v57_v29  ;;  %v141_v43 = vrot.slane %v1181_v12, 2  ;;  %v177_v48 = vpack.c.bf16 %v169_v32, %v161_v31  ;;  %v149_v51 = vrot.slane %v1190_v19, 2  ;;  %486 = vmatpush1.bf16.msra.mxu0 %v900_v45  ;;  %883 = vmatpush1.bf16.msra.mxu1 %v900_v45  ;;  %v354_v33 = vld [vmem:[#allocation2 + $0x18] sm:$0xff] }
  0x23   :  { %v322_v49 = vsel %vm318_vm2, %v305_v34, %v313_v38  ;;  %v330_v50 = vsel %vm318_vm2, %v313_v38, %v305_v34  ;;  %v223_v54 = vrot.slane %v1181_v12, 3  ;;  %v231_v56 = vrot.slane %v1190_v19, 3  ;;  %487 = vmatprep.subr.bf16.mxu0 %v903_v3  ;;  %874 = vmatprep.subr.bf16.mxu1 %v903_v3  ;;  %v362_v38 = vld [vmem:[#allocation2 + $0x58] sm:$0xff] }
  0x24   :  { %273 = vrot.lane.b32.xlu0 %v255_v16, %s905_s6  ;;  %v338_v53 = vpack.c.bf16 %v330_v50, %v322_v49  ;;  %v61_v57 = vrot.slane %v1222_v39, 1  ;;  %v259_v58 = vpack.c.bf16 %v251_v40, %v243_v37  ;;  %v92_v59 = vpack.c.bf16 %v84_v42, %v76_v41 }
  0x25   :  { %117 = vrot.lane.b32.xlu1 %v95_v35, %s904_s26  ;;  %v69_v60 = vrot.slane %v1234_v44, 1  ;;  %v309_v61 = vrot.slane %v1222_v39, 4  ;;  %v158_v62 = vsel %vm154_vm4, %v141_v43, %v149_v51  ;;  %v166_v63 = vsel %vm154_vm4, %v149_v51, %v141_v43  ;;  %v356_v43 = vld [vmem:[#allocation2 + $0x28] sm:$0xff] }
  0x26   :  { %346 = vst.msk [vmem:[#allocation2 + $0x38] sm:$0xff] %vm45_vm0, %v338_v53  ;;  %v240_v0 = vsel %vm236_vm3, %v223_v54, %v231_v56  ;;  %v317_v4 = vrot.slane %v1234_v44, 4  ;;  %v248_v7 = vsel %vm236_vm3, %v231_v56, %v223_v54  ;;  %v145_v16 = vrot.slane %v1222_v39, 2  ;;  %488 = vmatpush1.bf16.msra.mxu0 %v901_v5  ;;  %884 = vmatpush1.bf16.msra.mxu1 %v901_v5 }
  0x27   :  { %v80_v8 = vsel %vm72_vm1, %v61_v57, %v69_v60  ;;  %v88_v10 = vsel %vm72_vm1, %v69_v60, %v61_v57  ;;  %v153_v17 = vrot.slane %v1234_v44, 2  ;;  %v174_v18 = vpack.c.bf16 %v166_v63, %v158_v62  ;;  %489 = vmatprep.subr.bf16.mxu0 %v903_v3  ;;  %875 = vmatprep.subr.bf16.mxu1 %v903_v3 }
  0x28   :  { %199 = vrot.lane.b32.xlu0 %v177_v48, %s906_s13  ;;  %v326_v11 = vsel %vm318_vm2, %v309_v61, %v317_v4  ;;  %v334_v15 = vsel %vm318_vm2, %v317_v4, %v309_v61  ;;  %v37_v21 = vpack.c.bf16 %v948_v2, %v943_v1  ;;  %v227_v22 = vrot.slane %v1222_v39, 3  ;;  %v364_v50 = vld [vmem:[#allocation2 + $0x68] sm:$0xff] }
  0x29   :  { %281 = vrot.lane.b32.xlu1 %v259_v58, %s905_s6  ;;  %v342_v20 = vpack.c.bf16 %v334_v15, %v326_v11  ;;  %v235_v23 = vrot.slane %v1234_v44, 3  ;;  %v41_v24 = vpack.c.bf16 %v973_v14, %v968_v13  ;;  %v256_v27 = vpack.c.bf16 %v248_v7, %v240_v0  ;;  %v651_v11 = vld [vmem:[%s1438_s3 + $0x8] sm:$0xff] }
  0x2a   :  { %v96_v28 = vpack.c.bf16 %v88_v10, %v80_v8  ;;  %46 = vst.msk [vmem:[#allocation2] sm:$0xff] %vm45_vm0, %v37_v21  ;;  %v38_v1 = vpack.c.bf16 %v1015_v36, %v1001_v30  ;;  %v162_v2 = vsel %vm154_vm4, %v145_v16, %v153_v17  ;;  %v42_v13 = vpack.c.bf16 %v1052_v55, %v1031_v46  ;;  %v650_v10 = vld [vmem:[%s1438_s3] sm:$0xff] }
  0x2b   :  { %350 = vst.msk [vmem:[#allocation2 + $0x78] sm:$0xff] %vm45_vm0, %v342_v20  ;;  %50 = vst.msk [vmem:[#allocation2 + $0x40] sm:$0xff] %vm45_vm0, %v41_v24  ;;  %v39_v14 = vpack.c.bf16 %v1102_v25, %v1076_v9  ;;  %v170_v30 = vsel %vm154_vm4, %v153_v17, %v145_v16  ;;  %v43_v36 = vpack.c.bf16 %v1147_v52, %v1136_v47  ;;  %490 = vmatpush1.bf16.msra.mxu0 %v902_v26  ;;  %v907_v16 = vmov 0.0|0.0   ;;  %v652_v17 = vld [vmem:[%s1438_s3 + $0x10] sm:$0xff]  ;;  %v654_v21 = vld [vmem:[%s1438_s3 + $0x20] sm:$0xff] }
  0x2c   :  { %111 = vrot.lane.b32.xlu0 %v92_v59, %s904_s26  ;;  %47 = vst.msk [vmem:[#allocation2 + $0x10] sm:$0xff] %vm45_vm0, %v38_v1  ;;  %v40_v29 = vpack.c.bf16 %v1190_v19, %v1181_v12  ;;  %v44_v3 = vpack.c.bf16 %v1234_v44, %v1222_v39  ;;  %v244_v46 = vsel %vm236_vm3, %v227_v22, %v235_v23  ;;  %51 = vst.msk [vmem:[#allocation2 + $0x50] sm:$0xff] %vm45_vm0, %v42_v13  ;;  %v656_v24 = vld [vmem:[%s1438_s3 + $0x30] sm:$0xff]  ;;  %v659_v1 = vld [vmem:[%s1438_s3 + $0x48] sm:$0xff]  ;;  %vm908_vm8 = vmmov 0  }
  0x2d   :  { %193 = vrot.lane.b32.xlu1 %v174_v18, %s906_s13  ;;  %v252_v55 = vsel %vm236_vm3, %v235_v23, %v227_v22  ;;  %885 = vmatpush1.bf16.msra.mxu1 %v902_v26  ;;  %48 = vst.msk [vmem:[#allocation2 + $0x20] sm:$0xff] %vm45_vm0, %v39_v14  ;;  %52 = vst.msk [vmem:[#allocation2 + $0x60] sm:$0xff] %vm45_vm0, %v43_v36  ;;  %v178_v9 = vpack.c.bf16 %v170_v30, %v162_v2  ;;  %v358_v57 = vld [vmem:[#allocation2 + $0x38] sm:$0xff]  ;;  %v655_v22 = vld [vmem:[%s1438_s3 + $0x28] sm:$0xff]  ;;  %vm681_vm9 = vcmask 1041409   ;;  %vm683_vm10 = vcmask 1042434  }
  0x2e   :  { %49 = vst.msk [vmem:[#allocation2 + $0x30] sm:$0xff] %vm45_vm0, %v40_v29  ;;  %53 = vst.msk [vmem:[#allocation2 + $0x70] sm:$0xff] %vm45_vm0, %v44_v3  ;;  %v260_v25 = vpack.c.bf16 %v252_v55, %v244_v46  ;;  %v843_v15 = vpack.c.bf16 %v651_v11, %v650_v10  ;;  %842 = vmatprep.subr.bf16.mxu1 %v907_v16  ;;  %v653_v18 = vld [vmem:[%s1438_s3 + $0x18] sm:$0xff]  ;;  %v849_v23 = vpack.c.bf16 %v655_v22, %v654_v21  ;;  %v660_v13 = vld [vmem:[%s1438_s3 + $0x50] sm:$0xff]  ;;  %vm685_vm11 = vcmask 1043459  }
  0x2f   :  { %v846_v20 = vpack.c.bf16 %v653_v18, %v652_v17  ;;  %v657_v26 = vld [vmem:[%s1438_s3 + $0x38] sm:$0xff]  ;;  %v662_v36 = vld [vmem:[%s1438_s3 + $0x60] sm:$0xff]  ;;  %v663_v29 = vld [vmem:[%s1438_s3 + $0x68] sm:$0xff]  ;;  %vm687_vm12 = vcmask 1044484   ;;  %vm689_vm13 = vcmask 1045509   ;;  %vm691_vm14 = vcmask 1046534  }
  0x30   :  { %275 = vrot.lane.b32.xlu0 %v256_v27, %s905_s6  ;;  %v852_v27 = vpack.c.bf16 %v657_v26, %v656_v24  ;;  %v661_v14 = vld [vmem:[%s1438_s3 + $0x58] sm:$0xff]  ;;  %v861_v3 = vpack.c.bf16 %v663_v29, %v662_v36  ;;  %v664_v46 = vld [vmem:[%s1438_s3 + $0x70] sm:$0xff]  ;;  %vm693_vm15 = vcmask 1047559  }
  0x31   :  { %119 = vrot.lane.b32.xlu1 %v96_v28, %s904_s26  ;;  %v658_v28 = vld [vmem:[%s1438_s3 + $0x40] sm:$0xff]  ;;  %v858_v30 = vpack.c.bf16 %v661_v14, %v660_v13  ;;  %v665_v55 = vld [vmem:[%s1438_s3 + $0x78] sm:$0xff] }
  0x32   :  { %v366_v62 = vld [vmem:[#allocation2 + $0x78] sm:$0xff]  ;;  %v855_v2 = vpack.c.bf16 %v659_v1, %v658_v28 }
  0x34   :  { %201 = vrot.lane.b32.xlu0 %v178_v9, %s906_s13  ;;  %v864_v9 = vpack.c.bf16 %v665_v55, %v664_v46 }
  0x35   :  { %283 = vrot.lane.b32.xlu1 %v260_v25, %s905_s6  ;;  %v909_v25 = vmov 0.0  }
  0x7a   :  { %v106_v6 = vpop.permute.xlu0 %105 }
  0x7b   :  { %130 = vst.msk [vmem:[#allocation2] sm:$0xff] %vm129_vm5, %v106_v6  ;;  %v270_v47 = vpop.permute.xlu1 %269 }
  0x7e   :  { %v188_v52 = vpop.permute.xlu0 %187 }
  0x7f   :  { %212 = vst.msk [vmem:[#allocation2] sm:$0xff] %vm211_vm6, %v188_v52  ;;  %v114_v12 = vpop.permute.xlu1 %113  ;;  %v1412_v52 = vld [vmem:[%s1439_s2 + $0x8] sm:$0xff] }
  0x80   :  { %294 = vst.msk [vmem:[#allocation2] sm:$0xff] %vm293_vm7, %v270_v47  ;;  %v1407_v47 = vld [vmem:[%s1439_s2] sm:$0xff] }
  0x81   :  { %134 = vst.msk [vmem:[#allocation2 + $0x40] sm:$0xff] %vm129_vm5, %v114_v12 }
  0x82   :  { %v196_v19 = vpop.permute.xlu0 %195 }
  0x83   :  { %216 = vst.msk [vmem:[#allocation2 + $0x40] sm:$0xff] %vm211_vm6, %v196_v19  ;;  %v278_v31 = vpop.permute.xlu1 %277 }
  0x84   :  { %298 = vst.msk [vmem:[#allocation2 + $0x40] sm:$0xff] %vm293_vm7, %v278_v31 }
  0x86   :  { %v108_v32 = vpop.permute.xlu0 %107 }
  0x87   :  { %131 = vst.msk [vmem:[#allocation2 + $0x10] sm:$0xff] %vm129_vm5, %v108_v32  ;;  %v190_v34 = vpop.permute.xlu1 %189  ;;  %v351_v35 = vld [vmem:[#allocation2] sm:$0xff] }
  0x88   :  { %213 = vst.msk [vmem:[#allocation2 + $0x10] sm:$0xff] %vm211_vm6, %v190_v34  ;;  %504 = vmatmul.mubr.bf16.vlgmr.msra.gmra.mrb[0].mxu0 %v351_v35 }
  0x89   :  { %782 = vmatprep.mubr.msk.bf16.mxu0 %vm45_vm0, %v354_v33 }
  0x8a   :  { %v272_v37 = vpop.permute.xlu0 %271 }
  0x8b   :  { %295 = vst.msk [vmem:[#allocation2 + $0x10] sm:$0xff] %vm293_vm7, %v272_v37  ;;  %v116_v39 = vpop.permute.xlu1 %115  ;;  %v359_v40 = vld [vmem:[#allocation2 + $0x40] sm:$0xff] }
  0x8c   :  { %135 = vst.msk [vmem:[#allocation2 + $0x50] sm:$0xff] %vm129_vm5, %v116_v39  ;;  %536 = vmatmul.mubr.bf16.vlgmr.msra.gmra.mrb[0].mxu1 %v359_v40 }
  0x8d   :  { %786 = vmatprep.mubr.msk.bf16.mxu1 %vm45_vm0, %v362_v38  ;;  %844 = vmatpush3.bf16.msra.mxu1 %v843_v15 }
  0x8e   :  { %v198_v41 = vpop.permute.xlu0 %197  ;;  %845 = vmatprep.subr.bf16.mxu1 %v907_v16 }
  0x8f   :  { %217 = vst.msk [vmem:[#allocation2 + $0x50] sm:$0xff] %vm211_vm6, %v198_v41  ;;  %v280_v42 = vpop.permute.xlu1 %279 }
  0x90   :  { %299 = vst.msk [vmem:[#allocation2 + $0x50] sm:$0xff] %vm293_vm7, %v280_v42 }
  0x91   :  { %847 = vmatpush3.bf16.msra.mxu1 %v846_v20 }
  0x92   :  { %v110_v44 = vpop.permute.xlu0 %109  ;;  %v353_v45 = vld [vmem:[#allocation2 + $0x10] sm:$0xff]  ;;  %848 = vmatprep.subr.bf16.mxu1 %v907_v16 }
  0x93   :  { %132 = vst.msk [vmem:[#allocation2 + $0x20] sm:$0xff] %vm129_vm5, %v110_v44  ;;  %v192_v48 = vpop.permute.xlu1 %191  ;;  %512 = vmatmul.mubr.bf16.gmra.mrb[4].mxu0 %v353_v45 }
  0x94   :  { %214 = vst.msk [vmem:[#allocation2 + $0x20] sm:$0xff] %vm211_vm6, %v192_v48  ;;  %783 = vmatprep.mubr.msk.bf16.mxu0 %vm45_vm0, %v356_v43 }
  0x95   :  { %850 = vmatpush3.bf16.msra.mxu1 %v849_v23 }
  0x96   :  { %v274_v49 = vpop.permute.xlu0 %273  ;;  %851 = vmatprep.subr.bf16.mxu1 %v907_v16 }
  0x97   :  { %296 = vst.msk [vmem:[#allocation2 + $0x20] sm:$0xff] %vm293_vm7, %v274_v49  ;;  %v118_v51 = vpop.permute.xlu1 %117  ;;  %v361_v53 = vld [vmem:[#allocation2 + $0x50] sm:$0xff] }
  0x98   :  { %136 = vst.msk [vmem:[#allocation2 + $0x60] sm:$0xff] %vm129_vm5, %v118_v51  ;;  %544 = vmatmul.mubr.bf16.gmra.mrb[4].mxu1 %v361_v53 }
  0x99   :  { %787 = vmatprep.mubr.msk.bf16.mxu1 %vm45_vm0, %v364_v50  ;;  %853 = vmatpush3.bf16.msra.mxu1 %v852_v27 }
  0x9a   :  { %v200_v54 = vpop.permute.xlu0 %199  ;;  %854 = vmatprep.subr.bf16.mxu1 %v907_v16 }
  0x9b   :  { %218 = vst.msk [vmem:[#allocation2 + $0x60] sm:$0xff] %vm211_vm6, %v200_v54  ;;  %v282_v56 = vpop.permute.xlu1 %281 }
  0x9c   :  { %300 = vst.msk [vmem:[#allocation2 + $0x60] sm:$0xff] %vm293_vm7, %v282_v56 }
  0x9d   :  { %856 = vmatpush3.bf16.msra.mxu1 %v855_v2 }
  0x9e   :  { %v112_v58 = vpop.permute.xlu0 %111  ;;  %v355_v59 = vld [vmem:[#allocation2 + $0x20] sm:$0xff]  ;;  %857 = vmatprep.subr.bf16.mxu1 %v907_v16 }
  0x9f   :  { %133 = vst.msk [vmem:[#allocation2 + $0x30] sm:$0xff] %vm129_vm5, %v112_v58  ;;  %v194_v60 = vpop.permute.xlu1 %193  ;;  %520 = vmatmul.mubr.bf16.gmra.mrb[8].mxu0 %v355_v59 }
  0xa0   :  { %215 = vst.msk [vmem:[#allocation2 + $0x30] sm:$0xff] %vm211_vm6, %v194_v60  ;;  %784 = vmatprep.mubr.msk.bf16.mxu0 %vm45_vm0, %v358_v57 }
  0xa1   :  { %859 = vmatpush3.bf16.msra.mxu1 %v858_v30 }
  0xa2   :  { %v276_v61 = vpop.permute.xlu0 %275  ;;  %860 = vmatprep.subr.bf16.mxu1 %v907_v16 }
  0xa3   :  { %297 = vst.msk [vmem:[#allocation2 + $0x30] sm:$0xff] %vm293_vm7, %v276_v61  ;;  %v120_v63 = vpop.permute.xlu1 %119  ;;  %v363_v0 = vld [vmem:[#allocation2 + $0x60] sm:$0xff] }
  0xa4   :  { %137 = vst.msk [vmem:[#allocation2 + $0x70] sm:$0xff] %vm129_vm5, %v120_v63  ;;  %552 = vmatmul.mubr.bf16.gmra.mrb[8].mxu1 %v363_v0 }
  0xa5   :  { %788 = vmatprep.mubr.msk.bf16.mxu1 %vm45_vm0, %v366_v62  ;;  %862 = vmatpush3.bf16.msra.mxu1 %v861_v3 }
  0xa6   :  { %v202_v4 = vpop.permute.xlu0 %201  ;;  %863 = vmatprep.subr.bf16.mxu1 %v907_v16 }
  0xa7   :  { %219 = vst.msk [vmem:[#allocation2 + $0x70] sm:$0xff] %vm211_vm6, %v202_v4  ;;  %v284_v5 = vpop.permute.xlu1 %283 }
  0xa8   :  { %301 = vst.msk [vmem:[#allocation2 + $0x70] sm:$0xff] %vm293_vm7, %v284_v5 }
  0xa9   :  { %865 = vmatpush3.bf16.msra.mxu1 %v864_v9 }
  0xaa   :  { %v357_v7 = vld [vmem:[#allocation2 + $0x30] sm:$0xff] }
  0xab   :  { %528 = vmatmul.mubr.bf16.gmra.mrb[12].mxu0 %v357_v7 }
  0xaf   :  { %v365_v8 = vld [vmem:[#allocation2 + $0x70] sm:$0xff] }
  0xb0   :  { %560 = vmatmul.mubr.bf16.gmra.mrb[12].mxu1 %v365_v8 }
  0xb1   :  { %839 = vmatprep.mubr.msk.f32.mxu1 %vm908_vm8, %v909_v25 }
 0x15b   :  { %v505_v6 = vpop.f32.mrb[0].mxu0 }
 0x15c   :  { %v507_v12 = vpop.f32.mrb[1].mxu0  ;;  %v570_v31 = vadd.f32 %v1407_v47, %v505_v6 }
 0x15d   :  { %v508_v19 = vpop.f32.mrb[2].mxu0 }
 0x15e   :  { %v571_v32 = vadd.f32 %v1412_v52, %v508_v19  ;;  %v510_v33 = vpop.f32.mrb[3].mxu0 }
 0x15f   :  { %v537_v34 = vpop.f32.mrb[0].mxu1 }
 0x160   :  { %v586_v35 = vmax.f32 %v570_v31, %v571_v32  ;;  %v539_v37 = vpop.f32.mrb[1].mxu1  ;;  %v578_v40 = vadd.f32 %v1407_v47, %v537_v34 }
 0x161   :  { %v540_v38 = vpop.f32.mrb[2].mxu1 }
 0x162   :  { %v587_v39 = vrot.slane %v586_v35, 4  ;;  %v579_v41 = vadd.f32 %v1412_v52, %v540_v38  ;;  %v542_v42 = vpop.f32.mrb[3].mxu1 }
 0x164   :  { %v614_v43 = vmax.f32 %v578_v40, %v579_v41  ;;  %v588_v44 = vmax.f32 %v586_v35, %v587_v39 }
 0x166   :  { %v513_v45 = vpop.f32.mrb[4].mxu0  ;;  %v589_v50 = vrot.slane %v588_v44, 2  ;;  %v615_v14 = vrot.slane %v614_v43, 4 }
 0x167   :  { %v515_v48 = vpop.f32.mrb[5].mxu0  ;;  %v572_v51 = vadd.f32 %v1407_v47, %v513_v45 }
 0x168   :  { %v516_v49 = vpop.f32.mrb[6].mxu0  ;;  %v590_v59 = vmax.f32 %v588_v44, %v589_v50  ;;  %v616_v6 = vmax.f32 %v614_v43, %v615_v14 }
 0x169   :  { %v573_v53 = vadd.f32 %v1412_v52, %v516_v49  ;;  %v518_v54 = vpop.f32.mrb[7].mxu0 }
 0x16a   :  { %v591_v7 = vrot.slane %v590_v59, 1  ;;  %v617_v41 = vrot.slane %v616_v6, 2 }
 0x16b   :  { %v593_v56 = vmax.f32 %v572_v51, %v573_v53  ;;  %v545_v57 = vpop.f32.mrb[4].mxu1 }
 0x16c   :  { %v547_v58 = vpop.f32.mrb[5].mxu1  ;;  %v580_v62 = vadd.f32 %v1407_v47, %v545_v57  ;;  %v592_v17 = vmax.f32 %v590_v59, %v591_v7  ;;  %v618_v54 = vmax.f32 %v616_v6, %v617_v41 }
 0x16d   :  { %v594_v60 = vrot.slane %v593_v56, 4  ;;  %v548_v61 = vpop.f32.mrb[6].mxu1 }
 0x16e   :  { %v581_v63 = vadd.f32 %v1412_v52, %v548_v61  ;;  %v550_v0 = vpop.f32.mrb[7].mxu1  ;;  %v642_v28 = vmax.f32 %v592_v17, 0.0 }
 0x16f   :  { %v595_v4 = vmax.f32 %v593_v56, %v594_v60 }
 0x170   :  { %v621_v5 = vmax.f32 %v580_v62, %v581_v63 }
 0x171   :  { %v596_v8 = vrot.slane %v595_v4, 2 }
 0x172   :  { %v521_v10 = vpop.f32.mrb[8].mxu0  ;;  %v622_v46 = vrot.slane %v621_v5, 4 }
 0x173   :  { %v597_v11 = vmax.f32 %v595_v4, %v596_v8  ;;  %v523_v15 = vpop.f32.mrb[9].mxu0  ;;  %v574_v20 = vadd.f32 %v1407_v47, %v521_v10  ;;  %v619_v4 = vrot.slane %v618_v54, 1 }
 0x174   :  { %v524_v16 = vpop.f32.mrb[10].mxu0  ;;  %v623_v31 = vmax.f32 %v621_v5, %v622_v46 }
 0x175   :  { %v598_v18 = vrot.slane %v597_v11, 1  ;;  %v575_v21 = vadd.f32 %v1412_v52, %v524_v16  ;;  %v526_v22 = vpop.f32.mrb[11].mxu0  ;;  %v620_v16 = vmax.f32 %v618_v54, %v619_v4 }
 0x176   :  { %v624_v42 = vrot.slane %v623_v31, 2 }
 0x177   :  { %v599_v23 = vmax.f32 %v597_v11, %v598_v18  ;;  %v600_v24 = vmax.f32 %v574_v20, %v575_v21  ;;  %v553_v26 = vpop.f32.mrb[8].mxu1  ;;  %v646_v22 = vmax.f32 %v620_v16, 0.0 }
 0x178   :  { %v555_v27 = vpop.f32.mrb[9].mxu1  ;;  %v582_v30 = vadd.f32 %v1407_v47, %v553_v26  ;;  %v625_v59 = vmax.f32 %v623_v31, %v624_v42 }
 0x179   :  { %v643_v1 = vmax.f32 %v599_v23, 0.0  ;;  %v601_v2 = vrot.slane %v600_v24, 4  ;;  %v556_v13 = vpop.f32.mrb[10].mxu1 }
 0x17a   :  { %v583_v36 = vadd.f32 %v1412_v52, %v556_v13  ;;  %v558_v29 = vpop.f32.mrb[11].mxu1  ;;  %v626_v7 = vrot.slane %v625_v59, 1 }
 0x17b   :  { %v682_v3 = vsel %vm681_vm9, %v643_v1, %v642_v28  ;;  %v602_v55 = vmax.f32 %v600_v24, %v601_v2 }
 0x17c   :  { %v628_v9 = vmax.f32 %v582_v30, %v583_v36  ;;  %v627_v18 = vmax.f32 %v625_v59, %v626_v7  ;;  %v789_v36 = vld [vmem:[%s1440_s4] ss:$0 sm:$0xff] }
 0x17d   :  { %v603_v25 = vrot.slane %v602_v55, 2 }
 0x17e   :  { %v629_v12 = vrot.slane %v628_v9, 4  ;;  %v529_v19 = vpop.f32.mrb[12].mxu0  ;;  %v647_v24 = vmax.f32 %v627_v18, 0.0 }
 0x17f   :  { %v604_v32 = vmax.f32 %v602_v55, %v603_v25  ;;  %v531_v33 = vpop.f32.mrb[13].mxu0  ;;  %v576_v38 = vadd.f32 %v1407_v47, %v529_v19 }
 0x180   :  { %v630_v34 = vmax.f32 %v628_v9, %v629_v12  ;;  %v532_v35 = vpop.f32.mrb[14].mxu0 }
 0x181   :  { %v605_v37 = vrot.slane %v604_v32, 1  ;;  %v577_v39 = vadd.f32 %v1412_v52, %v532_v35  ;;  %v534_v40 = vpop.f32.mrb[15].mxu0 }
 0x182   :  { %v631_v43 = vrot.slane %v630_v34, 2 }
 0x183   :  { %v606_v44 = vmax.f32 %v604_v32, %v605_v37  ;;  %v607_v45 = vmax.f32 %v576_v38, %v577_v39  ;;  %v561_v48 = vpop.f32.mrb[12].mxu1 }
 0x184   :  { %v563_v49 = vpop.f32.mrb[13].mxu1  ;;  %v584_v56 = vadd.f32 %v1407_v47, %v561_v48  ;;  %v632_v62 = vmax.f32 %v630_v34, %v631_v43 }
 0x185   :  { %v644_v50 = vmax.f32 %v606_v44, 0.0  ;;  %v608_v51 = vrot.slane %v607_v45, 4  ;;  %v564_v53 = vpop.f32.mrb[14].mxu1 }
 0x186   :  { %v585_v57 = vadd.f32 %v1412_v52, %v564_v53  ;;  %v566_v58 = vpop.f32.mrb[15].mxu1  ;;  %v633_v10 = vrot.slane %v632_v62, 1 }
 0x187   :  { %v684_v60 = vsel %vm683_vm10, %v644_v50, %v682_v3  ;;  %v609_v61 = vmax.f32 %v607_v45, %v608_v51 }
 0x188   :  { %v635_v63 = vmax.f32 %v584_v56, %v585_v57  ;;  %v634_v20 = vmax.f32 %v632_v62, %v633_v10 }
 0x189   :  { %v610_v0 = vrot.slane %v609_v61, 2 }
 0x18a   :  { %v636_v5 = vrot.slane %v635_v63, 4  ;;  %v648_v27 = vmax.f32 %v634_v20, 0.0 }
 0x18b   :  { %v611_v8 = vmax.f32 %v609_v61, %v610_v0 }
 0x18c   :  { %v637_v11 = vmax.f32 %v635_v63, %v636_v5 }
 0x18d   :  { %v612_v15 = vrot.slane %v611_v8, 1 }
 0x18e   :  { %v638_v17 = vrot.slane %v637_v11, 2 }
 0x18f   :  { %v613_v47 = vmax.f32 %v611_v8, %v612_v15 }
 0x190   :  { %v639_v52 = vmax.f32 %v637_v11, %v638_v17 }
 0x191   :  { %v645_v21 = vmax.f32 %v613_v47, 0.0 }
 0x192   :  { %v640_v23 = vrot.slane %v639_v52, 1 }
 0x193   :  { %v686_v26 = vsel %vm685_vm11, %v645_v21, %v684_v60 }
 0x194   :  { %v641_v28 = vmax.f32 %v639_v52, %v640_v23  ;;  %v688_v1 = vsel %vm687_vm12, %v646_v22, %v686_v26 }
 0x195   :  { %v690_v2 = vsel %vm689_vm13, %v647_v24, %v688_v1 }
 0x196   :  { %v649_v13 = vmax.f32 %v641_v28, 0.0  ;;  %v692_v14 = vsel %vm691_vm14, %v648_v27, %v690_v2 }
 0x198   :  { %v694_v30 = vsel %vm693_vm15, %v649_v13, %v692_v14 }
 0x199   :  { %840 = vmatmul.mubr.f32.vlgmr.msra.gmra.mrb[16].mxu1 %v694_v30 }
 0x26c   :  { %v762_v29 = vpop.f32.mrb[16].mxu1 }
 0x26d   :  { %v763_v3 = vadd.f32 %v789_v36, %v762_v29  ;;  %v841_v46 = vpop.f32.mrb[17].mxu1 }
 0x26f   :  { %766 = vst [vmem:[%s1441_s5] sm:$0xff] %v763_v3 }

</bundles_post_ra>
